<compile_context>
chip_gen: v7x
topology: tpu7x:2x2x1
jax: 0.10.0
libtpu: 0.0.40
codegen_flags: <defaults>
</compile_context>

<pallas_src>
import functools

import jax
import jax.numpy as jnp
from jax.experimental import pallas as pl
from jax.experimental.pallas import tpu as pltpu


def _round_up(x, m):
    return ((x + m - 1) // m) * m


def _pair_ranking_loss_kernel(t_row_ref, c_row_ref, e_row_ref, einv_row_ref,
                              t_col_ref, c_col_ref, e_col_ref, einv_col_ref,
                              out_ref, acc_ref, *, tm, tn):
    c = pl.program_id(1)

    @pl.when(c == 0)
    def _():
        acc_ref[...] = jnp.zeros_like(acc_ref)

    # Hoist the lane broadcasts of the (tm, 1) column operands once per grid
    # step; they are reused by every 128-lane group below.
    t_col = jnp.broadcast_to(t_col_ref[...], (tm, 128))
    c_col = jnp.broadcast_to(c_col_ref[...], (tm, 128))
    e_col = jnp.broadcast_to(e_col_ref[...], (tm, 128))
    einv_col = jnp.broadcast_to(einv_col_ref[...], (tm, 128))

    acc = acc_ref[...]
    for g in range(tn // 128):                     # static, fused per lane group
        lo = g * 128
        t_r = t_row_ref[:, lo:lo + 128]            # (1, 128)
        c_r = c_row_ref[:, lo:lo + 128]
        e_r = e_row_ref[:, lo:lo + 128]
        einv_r = einv_row_ref[:, lo:lo + 128]

        t_m = t_col - t_r                          # (tm, 128), VPU only
        c_m = c_col - c_r
        # exp(|c_i - c_j|) via the edge factorization (no per-pair exp).
        # Zero-padded e/einv make every padded pair exactly 0 here.
        exp_abs = jnp.maximum(e_col * einv_r, e_r * einv_col)
        # Exact sign-mismatch test (matches torch.sign semantics incl. zeros).
        incorrect = ((t_m > 0.0) != (c_m > 0.0)) | ((t_m < 0.0) != (c_m < 0.0))
        acc = acc + jnp.where(incorrect, exp_abs, 0.0)
    acc_ref[...] = acc

    # Epilogue (once per row tile): fold sublane groups to a lane-dense (8,128)
    # partial sum; the wrapper finishes the reduction / mean / margin.
    @pl.when(c == pl.num_programs(1) - 1)
    def _():
        a = acc_ref[...]
        part = jnp.zeros((8, 128), jnp.float32)
        for g in range(tm // 8):
            part = part + a[g * 8:(g + 1) * 8, :]
        out_ref[...] = part


def pair_ranking_loss(cost, targets, max_num, min_num, margin=3.5,
                      tm=256, tn=2048):
    n = targets.shape[0]
    cost = jnp.asarray(cost, jnp.float32).reshape(n)
    targets = jnp.asarray(targets, jnp.float32).reshape(n)
    max_num = jnp.asarray(max_num, jnp.float32)
    min_num = jnp.asarray(min_num, jnp.float32)

    # O(n) edge vectors, computed once (not per tile).  Shifting cost by its
    # max keeps e <= 1 and einv bounded by exp(spread) — same overflow
    # envelope as the reference's exp(|c_i - c_j|).
    # (max_num == min_num yields inf/NaN here, same as the reference.)
    t_norm = (jnp.log(targets + 1.0) - min_num) / (max_num - min_num)
    c_shift = cost - jnp.max(cost)
    e = jnp.exp(c_shift)
    einv = jnp.exp(-c_shift)

    # Tile sizes: multiples of (8, 128), clamped to the padded problem size.
    n8 = _round_up(n, 8)
    tm_eff = min(tm, n8)
    if tm_eff == n8 and n8 >= 16:
        # Keep >= 2 row tiles so the "parallel" row axis can shard across both
        # TensorCores on v7x (harmless on single-TC v5e/v6e).
        tm_eff = _round_up((n8 + 1) // 2, 8)
    tn_eff = min(tn, _round_up(n, 128))
    n_rows = _round_up(n, tm_eff)
    n_cols = _round_up(n, tn_eff)
    num_r = n_rows // tm_eff
    num_c = n_cols // tn_eff

    # Row (lane-major) and column (sublane-major) views of the SAME vectors.
    # e/einv zero-padding makes padded pairs vanish without any mask.
    def as_row(v):
        return jnp.pad(v, (0, n_cols - n)).reshape(1, n_cols)

    def as_col(v):
        return jnp.pad(v, (0, n_rows - n)).reshape(n_rows, 1)

    kernel = functools.partial(_pair_ranking_loss_kernel, tm=tm_eff, tn=tn_eff)
    row_spec = pl.BlockSpec((1, tn_eff), lambda r, c: (0, c))
    col_spec = pl.BlockSpec((tm_eff, 1), lambda r, c: (r, 0))

    partials = pl.pallas_call(
        kernel,
        out_shape=jax.ShapeDtypeStruct((num_r * 8, 128), jnp.float32),
        grid=(num_r, num_c),
        in_specs=[row_spec, row_spec, row_spec, row_spec,
                  col_spec, col_spec, col_spec, col_spec],
        out_specs=pl.BlockSpec((8, 128), lambda r, c: (r, 0)),
        scratch_shapes=[pltpu.VMEM((tm_eff, 128), jnp.float32)],
        compiler_params=pltpu.CompilerParams(
            dimension_semantics=("parallel", "arbitrary")),
    )(as_row(t_norm), as_row(cost), as_row(e), as_row(einv),
      as_col(t_norm), as_col(cost), as_col(e), as_col(einv))

    # exp(margin) and the mean over n*n pairs applied once to the reduced
    # scalar (jnp.exp keeps this valid for traced margins as well).
    return jnp.sum(partials) * jnp.exp(jnp.asarray(margin, jnp.float32)) / (n * n)


def _reference(cost, targets, max_num, min_num, margin=3.5):
    n = targets.shape[0]
    t = (jnp.log(targets + 1.0) - min_num) / (max_num - min_num)
    c = cost.reshape(n)
    t_m = t[:, None] - t[None, :]
    c_m = c[:, None] - c[None, :]
    mask = (jnp.sign(t_m) != jnp.sign(c_m)).astype(jnp.float32)
    return jnp.mean(mask * jnp.exp(margin + jnp.abs(c_m)))


if __name__ == "__main__":
    key = jax.random.PRNGKey(0)
    k1, k2 = jax.random.split(key)

    margin = 3.5

    # Case 1: tiny problem (matches the module's typical usage), single tile.
    n = 8
    cost = jax.random.normal(k1, (n, 1), dtype=jnp.float32)
    targets = jax.random.uniform(k2, (n,), dtype=jnp.float32,
                                 minval=0.0, maxval=100.0)
    log_t = jnp.log(targets + 1.0)
    min_num = float(jnp.min(log_t))
    max_num = float(jnp.max(log_t))

    loss = pair_ranking_loss(cost, targets, max_num, min_num, margin=margin)
    loss = jax.block_until_ready(loss)
    ref = _reference(cost, targets, max_num, min_num, margin=margin)
    assert jnp.allclose(loss, ref, rtol=1e-4, atol=1e-5), (loss, ref)

    # Case 2: padded rows + columns, two row tiles, multiple lane groups.
    k3, k4 = jax.random.split(k2)
    n2 = 200
    cost2 = jax.random.normal(k3, (n2, 1), dtype=jnp.float32)
    targets2 = jax.random.uniform(k4, (n2,), dtype=jnp.float32,
                                  minval=0.0, maxval=100.0)
    log_t2 = jnp.log(targets2 + 1.0)
    min2 = float(jnp.min(log_t2))
    max2 = float(jnp.max(log_t2))

    loss2 = pair_ranking_loss(cost2, targets2, max2, min2, margin=margin)
    loss2 = jax.block_until_ready(loss2)
    ref2 = _reference(cost2, targets2, max2, min2, margin=margin)
    assert jnp.allclose(loss2, ref2, rtol=1e-4, atol=1e-5), (loss2, ref2)

    print("KERNEL_OK")
</pallas_src>

<mosaic_0001>
module attributes {stable_mosaic.version = 11 : i64} {
  func.func @_pair_ranking_loss_kernel(%arg0: i32, %arg1: i32, %arg2: memref<1x128xf32, #tpu.memory_space<vmem>>, %arg3: memref<1x128xf32, #tpu.memory_space<vmem>>, %arg4: memref<1x128xf32, #tpu.memory_space<vmem>>, %arg5: memref<1x128xf32, #tpu.memory_space<vmem>>, %arg6: memref<8x1xf32, #tpu.memory_space<vmem>>, %arg7: memref<8x1xf32, #tpu.memory_space<vmem>>, %arg8: memref<8x1xf32, #tpu.memory_space<vmem>>, %arg9: memref<8x1xf32, #tpu.memory_space<vmem>>, %arg10: memref<8x128xf32, #tpu.memory_space<vmem>>, %arg11: memref<8x128xf32, #tpu.memory_space<vmem>>) attributes {dimension_semantics = [#tpu.dimension_semantics<parallel>, #tpu.dimension_semantics<arbitrary>], iteration_bounds = array<i64: 1, 1>, scalar_prefetch = 0 : i64, scratch_operands = 1 : i64, tpu.core_type = #tpu.core_type<tc>, window_params = [{transform_indices = @transform_0, window_bounds = array<i64: 1, 128>}, {transform_indices = @transform_1, window_bounds = array<i64: 1, 128>}, {transform_indices = @transform_2, window_bounds = array<i64: 1, 128>}, {transform_indices = @transform_3, window_bounds = array<i64: 1, 128>}, {transform_indices = @transform_4, window_bounds = array<i64: 8, 1>}, {transform_indices = @transform_5, window_bounds = array<i64: 8, 1>}, {transform_indices = @transform_6, window_bounds = array<i64: 8, 1>}, {transform_indices = @transform_7, window_bounds = array<i64: 8, 1>}, {transform_indices = @transform_8, window_bounds = array<i64: 8, 128>}]} {
    %c0_i32 = arith.constant 0 : i32
    %0 = arith.cmpi eq, %arg1, %c0_i32 : i32
    %1 = arith.extui %0 : i1 to i32
    %c0_i32_0 = arith.constant 0 : i32
    %2 = arith.cmpi ne, %1, %c0_i32_0 : i32
    scf.if %2 {
      %cst_26 = arith.constant 0.000000e+00 : f32
      %47 = vector.broadcast %cst_26 : f32 to vector<8x128xf32>
      %c0_27 = arith.constant 0 : index
      %c0_28 = arith.constant 0 : index
      %48 = vector.load %arg11[%c0_27, %c0_28] : memref<8x128xf32, #tpu.memory_space<vmem>>, vector<8x128xf32>
      tpu.vector_store %arg11[%c0_27, %c0_28], %47 {strides = array<i32>} : memref<8x128xf32, #tpu.memory_space<vmem>>, vector<8x128xf32>,
    } else {
    }
    %c0 = arith.constant 0 : index
    %c0_1 = arith.constant 0 : index
    %3 = vector.load %arg6[%c0, %c0_1] : memref<8x1xf32, #tpu.memory_space<vmem>>, vector<8x1xf32>
    %4 = vector.shape_cast %3 : vector<8x1xf32> to vector<8x1xf32>
    %5 = vector.broadcast %4 : vector<8x1xf32> to vector<8x128xf32>
    %c0_2 = arith.constant 0 : index
    %c0_3 = arith.constant 0 : index
    %6 = vector.load %arg7[%c0_2, %c0_3] : memref<8x1xf32, #tpu.memory_space<vmem>>, vector<8x1xf32>
    %7 = vector.shape_cast %6 : vector<8x1xf32> to vector<8x1xf32>
    %8 = vector.broadcast %7 : vector<8x1xf32> to vector<8x128xf32>
    %c0_4 = arith.constant 0 : index
    %c0_5 = arith.constant 0 : index
    %9 = vector.load %arg8[%c0_4, %c0_5] : memref<8x1xf32, #tpu.memory_space<vmem>>, vector<8x1xf32>
    %10 = vector.shape_cast %9 : vector<8x1xf32> to vector<8x1xf32>
    %11 = vector.broadcast %10 : vector<8x1xf32> to vector<8x128xf32>
    %c0_6 = arith.constant 0 : index
    %c0_7 = arith.constant 0 : index
    %12 = vector.load %arg9[%c0_6, %c0_7] : memref<8x1xf32, #tpu.memory_space<vmem>>, vector<8x1xf32>
    %13 = vector.shape_cast %12 : vector<8x1xf32> to vector<8x1xf32>
    %14 = vector.broadcast %13 : vector<8x1xf32> to vector<8x128xf32>
    %c0_8 = arith.constant 0 : index
    %c0_9 = arith.constant 0 : index
    %15 = vector.load %arg11[%c0_8, %c0_9] : memref<8x128xf32, #tpu.memory_space<vmem>>, vector<8x128xf32>
    %c0_10 = arith.constant 0 : index
    %c0_11 = arith.constant 0 : index
    %16 = vector.load %arg2[%c0_10, %c0_11] : memref<1x128xf32, #tpu.memory_space<vmem>>, vector<1x128xf32>
    %c0_12 = arith.constant 0 : index
    %c0_13 = arith.constant 0 : index
    %17 = vector.load %arg3[%c0_12, %c0_13] : memref<1x128xf32, #tpu.memory_space<vmem>>, vector<1x128xf32>
    %c0_14 = arith.constant 0 : index
    %c0_15 = arith.constant 0 : index
    %18 = vector.load %arg4[%c0_14, %c0_15] : memref<1x128xf32, #tpu.memory_space<vmem>>, vector<1x128xf32>
    %c0_16 = arith.constant 0 : index
    %c0_17 = arith.constant 0 : index
    %19 = vector.load %arg5[%c0_16, %c0_17] : memref<1x128xf32, #tpu.memory_space<vmem>>, vector<1x128xf32>
    %20 = vector.broadcast %16 : vector<1x128xf32> to vector<8x128xf32>
    %21 = arith.subf %5, %20 : vector<8x128xf32>
    %22 = vector.broadcast %17 : vector<1x128xf32> to vector<8x128xf32>
    %23 = arith.subf %8, %22 : vector<8x128xf32>
    %24 = vector.broadcast %19 : vector<1x128xf32> to vector<8x128xf32>
    %25 = arith.mulf %11, %24 : vector<8x128xf32>
    %26 = vector.broadcast %18 : vector<1x128xf32> to vector<8x128xf32>
    %27 = arith.mulf %26, %14 : vector<8x128xf32>
    %28 = arith.maximumf %25, %27 : vector<8x128xf32>
    %cst = arith.constant 0.000000e+00 : f32
    %29 = vector.broadcast %cst : f32 to vector<8x128xf32>
    %30 = arith.cmpf ogt, %21, %29 : vector<8x128xf32>
    %cst_18 = arith.constant 0.000000e+00 : f32
    %31 = vector.broadcast %cst_18 : f32 to vector<8x128xf32>
    %32 = arith.cmpf ogt, %23, %31 : vector<8x128xf32>
    %33 = arith.xori %30, %32 : vector<8x128xi1>
    %cst_19 = arith.constant 0.000000e+00 : f32
    %34 = vector.broadcast %cst_19 : f32 to vector<8x128xf32>
    %35 = arith.cmpf olt, %21, %34 : vector<8x128xf32>
    %cst_20 = arith.constant 0.000000e+00 : f32
    %36 = vector.broadcast %cst_20 : f32 to vector<8x128xf32>
    %37 = arith.cmpf olt, %23, %36 : vector<8x128xf32>
    %38 = arith.xori %35, %37 : vector<8x128xi1>
    %39 = arith.ori %33, %38 : vector<8x128xi1>
    %cst_21 = arith.constant 0.000000e+00 : f32
    %40 = vector.broadcast %cst_21 : f32 to vector<8x128xf32>
    %41 = arith.select %39, %28, %40 : vector<8x128xi1>, vector<8x128xf32>
    %42 = arith.addf %15, %41 : vector<8x128xf32>
    %c0_22 = arith.constant 0 : index
    %c0_23 = arith.constant 0 : index
    %43 = vector.load %arg11[%c0_22, %c0_23] : memref<8x128xf32, #tpu.memory_space<vmem>>, vector<8x128xf32>
    tpu.vector_store %arg11[%c0_22, %c0_23], %42 {strides = array<i32>} : memref<8x128xf32, #tpu.memory_space<vmem>>, vector<8x128xf32>,
    %c0_i32_24 = arith.constant 0 : i32
    %44 = arith.cmpi eq, %arg1, %c0_i32_24 : i32
    %45 = arith.extui %44 : i1 to i32
    %c0_i32_25 = arith.constant 0 : i32
    %46 = arith.cmpi ne, %45, %c0_i32_25 : i32
    scf.if %46 {
      %c0_26 = arith.constant 0 : index
      %c0_27 = arith.constant 0 : index
      %47 = vector.load %arg11[%c0_26, %c0_27] : memref<8x128xf32, #tpu.memory_space<vmem>>, vector<8x128xf32>
      %cst_28 = arith.constant 0.000000e+00 : f32
      %48 = vector.broadcast %cst_28 : f32 to vector<8x128xf32>
      %49 = arith.addf %48, %47 : vector<8x128xf32>
      %c0_29 = arith.constant 0 : index
      %c0_30 = arith.constant 0 : index
      %50 = vector.load %arg10[%c0_29, %c0_30] : memref<8x128xf32, #tpu.memory_space<vmem>>, vector<8x128xf32>
      tpu.vector_store %arg10[%c0_29, %c0_30], %49 {strides = array<i32>} : memref<8x128xf32, #tpu.memory_space<vmem>>, vector<8x128xf32>,
    } else {
    }
    return
  }
  func.func @transform_0(%arg0: i32, %arg1: i32) -> (i32, i32) {
    %c0_i32 = arith.constant 0 : i32
    %c0_i32_0 = arith.constant 0 : i32
    return %c0_i32, %arg1 : i32, i32
  }
  func.func @transform_1(%arg0: i32, %arg1: i32) -> (i32, i32) {
    %c0_i32 = arith.constant 0 : i32
    %c0_i32_0 = arith.constant 0 : i32
    return %c0_i32, %arg1 : i32, i32
  }
  func.func @transform_2(%arg0: i32, %arg1: i32) -> (i32, i32) {
    %c0_i32 = arith.constant 0 : i32
    %c0_i32_0 = arith.constant 0 : i32
    return %c0_i32, %arg1 : i32, i32
  }
  func.func @transform_3(%arg0: i32, %arg1: i32) -> (i32, i32) {
    %c0_i32 = arith.constant 0 : i32
    %c0_i32_0 = arith.constant 0 : i32
    return %c0_i32, %arg1 : i32, i32
  }
  func.func @transform_4(%arg0: i32, %arg1: i32) -> (i32, i32) {
    %c0_i32 = arith.constant 0 : i32
    %c0_i32_0 = arith.constant 0 : i32
    return %arg0, %c0_i32 : i32, i32
  }
  func.func @transform_5(%arg0: i32, %arg1: i32) -> (i32, i32) {
    %c0_i32 = arith.constant 0 : i32
    %c0_i32_0 = arith.constant 0 : i32
    return %arg0, %c0_i32 : i32, i32
  }
  func.func @transform_6(%arg0: i32, %arg1: i32) -> (i32, i32) {
    %c0_i32 = arith.constant 0 : i32
    %c0_i32_0 = arith.constant 0 : i32
    return %arg0, %c0_i32 : i32, i32
  }
  func.func @transform_7(%arg0: i32, %arg1: i32) -> (i32, i32) {
    %c0_i32 = arith.constant 0 : i32
    %c0_i32_0 = arith.constant 0 : i32
    return %arg0, %c0_i32 : i32, i32
  }
  func.func @transform_8(%arg0: i32, %arg1: i32) -> (i32, i32) {
    %c0_i32 = arith.constant 0 : i32
    %c0_i32_0 = arith.constant 0 : i32
    return %arg0, %c0_i32 : i32, i32
  }
}

</mosaic_0001>

<bundles_post_ra>
// kernel: tpu_custom_call.1
= control target key start
LH: loop header
LB: loop body
LE: loop exit
PB: predicated region body
PF: predicated region fallthrough
CT: control target
= control target key end

     0   :  { %v155_v2 = vmov 0   ;;  %s238_s0 = inlined_call_operand.vmem [shape: f32[1,128], index: 0, kind: input, shape index: {}]   ;;  %s239_s1 = inlined_call_operand.vmem [shape: f32[1,128], index: 1, kind: input, shape index: {}]   ;;  %s240_s2 = inlined_call_operand.vmem [shape: f32[1,128], index: 2, kind: input, shape index: {}]   ;;  %s241_s3 = inlined_call_operand.vmem [shape: f32[1,128], index: 3, kind: input, shape index: {}]   ;;  %s242_s4 = inlined_call_operand.vmem [shape: f32[8,1], index: 4, kind: input, shape index: {}]   ;;  %s243_s5 = inlined_call_operand.vmem [shape: f32[8,1], index: 5, kind: input, shape index: {}]   ;;  %s244_s6 = inlined_call_operand.vmem [shape: f32[8,1], index: 6, kind: input, shape index: {}]   ;;  %s245_s7 = inlined_call_operand.vmem [shape: f32[8,1], index: 7, kind: input, shape index: {}]   ;;  %s246_s8 = inlined_call_operand.hbm [shape: f32[8,128], index: 8, kind: output, shape index: {}]  }
   0x1   :  { %v47_v0 = vld [vmem:[%s244_s6] sm:$0xff]  ;;  %130 = vset.pattern.permute.xlu1 %v155_v2  ;;  %129 = vset.pattern.permute.xlu0 %v155_v2 }
   0x2   :  { %v35_v1 = vld [vmem:[%s242_s4] sm:$0xff]  ;;  %50 = vperm.xlu1 %130, %v47_v0  }
   0x3   :  { %38 = vperm.xlu0 %129, %v35_v1  }
   0x4   :  { %13 = vsyncpa [#allocation4], 0  ;;  %v53_v3 = vld [vmem:[%s245_s7] sm:$0xff] }
   0x5   :  { %v41_v4 = vld [vmem:[%s243_s5] sm:$0xff] }
   0x6   :  { %56 = vperm.xlu1 %130, %v53_v3   ;;  %v123_v6 = vld [vmem:[%s238_s0] ss:$0 sm:$0xff]  ;;  %s156_s0 = smov [#allocation3]  }
   0x7   :  { %44 = vperm.xlu0 %129, %v41_v4   ;;  %v125_v8 = vld [vmem:[%s241_s3] ss:$0 sm:$0xff]  ;;  %s115_s3 = sshll.u32 %s156_s0, 4  ;;  %s116_s3 = int_to_ptr.vmem [resolvable:$true] %s115_s3 }
   0x8   :  { %v126_v9 = vld [vmem:[%s240_s2] ss:$0 sm:$0xff]  ;;  %p136_p1 = scmp.lt.s32.totalorder %s116_s3, %s116_s3 }
   0x9   :  { %v124_v10 = vld [vmem:[%s239_s1] ss:$0 sm:$0xff]  ;;  %s131_s1 = scalar_lea.vmem %s116_s3, 128 }
   0xa   :  { %p132_p0 = scmp.ne.s32.totalorder %s116_s3, %s131_s1  ;;  %p137_p2 = scmp.lt.s32.totalorder %s131_s1, %s131_s1 }
   0xc   :  { %p138_p3 = por %p137_p2, %p136_p1 }
   0xe   :  { %p139_p4 = pnand %p138_p3, %p132_p0 }
  0x81   :  { %v51_v5 = vpop.permute.xlu1 %50 }
  0x82   :  { %v39_v7 = vpop.permute.xlu0 %38  ;;  %v84_v14 = vmul.f32 %v125_v8, %v51_v5 }
  0x83   :  { %v70_v11 = vsub.f32 %v39_v7, %v123_v6 }
  0x85   :  { %v57_v12 = vpop.permute.xlu1 %56  ;;  %vm93_vm0 = vcmp.gt.f32.partialorder %v70_v11, 0.0  ;;  %vm96_vm3 = vcmp.lt.f32.partialorder %v70_v11, 0.0 }
  0x86   :  { %v45_v13 = vpop.permute.xlu0 %44  ;;  %v91_v15 = vmul.f32 %v126_v9, %v57_v12 }
  0x87   :  { %v77_v16 = vsub.f32 %v45_v13, %v124_v10 }
  0x88   :  { %v92_v17 = vmax.f32 %v84_v14, %v91_v15 }
  0x89   :  { %vm94_vm1 = vcmp.gt.f32.partialorder %v77_v16, 0.0  ;;  %vm97_vm2 = vcmp.lt.f32.partialorder %v77_v16, 0.0 }
  0x8a   :  { %vm95_vm4 = vmxor %vm93_vm0, %vm94_vm1 }
  0x8b   :  { %vm98_vm5 = vmxor %vm96_vm3, %vm97_vm2 }
  0x8c   :  { %vm99_vm6 = vmor %vm95_vm4, %vm98_vm5 }
  0x8d   :  { %v100_v18 = vsel %vm99_vm6, %v92_v17, 0.0 }
  0x8e   :  { %108 = vst [vmem:[#allocation3] sm:$0xff] %v100_v18 }
  0x8f   :  { %142 = shalt.err (!%p139_p4)
}
  0x90   :  { %s143_s18 = scalar_lea.hbm %s246_s8, 128 }
  0x91   :  { %p144_p5 = scmp.ne.s32.totalorder %s246_s8, %s143_s18  ;;  %p147_p6 = scmp.lt.u32.totalorder %s143_s18, %s246_s8 }
  0x93   :  { %p149_p7 = pnand %p147_p6, %p144_p5 }
  0x95   :  { %152 = shalt.err (!%p149_p7)
}
  0x96   :  { %118 = dma.vmem_to_hbm [thread:$0]  %s116_s3, 128, %s246_s8, [#allocation4]  }
  0x97   :  { %153 = dma.done.wait [#allocation4], 128  }
  0x98   :  { %154 = vsyncadd [#allocation4], 4294967168 }
  0x99   :  { %122 = vsyncpa [#allocation4], 1 }

</bundles_post_ra>
